<compile_context>
chip_gen: v7x
topology: tpu7x:2x2x1
jax: 0.10.0
libtpu: 0.0.40
codegen_flags: <defaults>
</compile_context>

<pallas_src>
import math
from functools import partial

import jax
import jax.numpy as jnp
from jax.experimental import pallas as pl
from jax.experimental.pallas import tpu as pltpu

LANE = 128  # TPU lane width; output is padded to this for lane-dense stores.


def _round_up(x, m):
    return ((x + m - 1) // m) * m


def critic_kernel(xin_ref, w123_ref, w4_ref, b4_ref, w5_ref, b5_ref,
                  w6_ref, b6_ref, out_ref, *, compute_dtype):
    """One batch tile: 4 MXU matmuls, 3 ReLUs, lane-dense output write."""
    cd = compute_dtype

    # Fused layer 1: block-diagonal W123 with biases folded via the ones column
    # appended to xin in the wrapper.  xin: [TB, O+A+Oth+1] -> x123: [TB, 3H].
    x123 = jnp.maximum(
        jnp.dot(xin_ref[...].astype(cd), w123_ref[...].astype(cd),
                preferred_element_type=jnp.float32), 0.0)

    # v2[0]: Linear(3H -> 2H) + ReLU  (applied directly to the fused activation).
    h = jnp.maximum(
        jnp.dot(x123.astype(cd), w4_ref[...].astype(cd),
                preferred_element_type=jnp.float32) + b4_ref[...], 0.0)

    # v2[2]: Linear(2H -> H) + ReLU.
    h = jnp.maximum(
        jnp.dot(h.astype(cd), w5_ref[...].astype(cd),
                preferred_element_type=jnp.float32) + b5_ref[...], 0.0)

    # v2[4]: Linear(H -> 1), computed into a lane-dense [TB, 128] padded block.
    out_ref[...] = jnp.dot(h.astype(cd), w6_ref[...].astype(cd),
                           preferred_element_type=jnp.float32) + b6_ref[...]


def pack_params(params, observation_size, action_size, other_size, hidden_size):
    """Pack PyTorch-layout params into kernel-ready fused / padded tensors."""
    h = hidden_size
    fin = observation_size + action_size + other_size

    # Block-diagonal fused first layer, with the three biases in the extra row
    # (fed by the ones column appended to the input).  Off-diagonal blocks are
    # explicitly zero, so the fusion is exact.
    w123 = jnp.zeros((fin + 1, 3 * h), jnp.float32)
    w123 = w123.at[:observation_size, 0:h].set(params["w1"])
    w123 = w123.at[observation_size:observation_size + action_size,
                   h:2 * h].set(params["w2"])
    w123 = w123.at[observation_size + action_size:fin, 2 * h:3 * h].set(params["w3"])
    b123 = jnp.concatenate([params["b1"], params["b2"], params["b3"]], axis=1)
    w123 = w123.at[fin, :].set(b123[0])

    # Lane-dense final layer: pad [H, 1] -> [H, 128] (extra lanes are zero).
    w6p = jnp.zeros((h, LANE), jnp.float32).at[:, :1].set(params["w6"])
    b6p = jnp.zeros((1, LANE), jnp.float32).at[:, :1].set(params["b6"])

    return {
        "w123": w123,
        "w4": params["w4"], "b4": params["b4"],
        "w5": params["w5"], "b5": params["b5"],
        "w6p": w6p, "b6p": b6p,
    }


def critic_forward(obs, act, oth, packed, *, block_batch=128,
                   compute_dtype=jnp.float32):
    """Batch-tiled Pallas forward.  Weights stay VMEM-resident across the grid."""
    batch = obs.shape[0]
    fin = obs.shape[1] + act.shape[1] + oth.shape[1]

    # Concatenate inputs + ones column (bias fold for the fused first layer).
    xin = jnp.concatenate(
        [obs, act, oth, jnp.ones((batch, 1), jnp.float32)], axis=1)

    # Batch tile: multiple of 8 sublanes; pad the batch so it divides evenly.
    # (block_batch=128 keeps the per-step footprint tiny — well under v7x's
    #  64 MiB VMEM even with double buffering; raise for large batches.)
    tb = min(block_batch, _round_up(batch, 8))
    bp = _round_up(batch, tb)
    if bp != batch:
        xin = jnp.pad(xin, ((0, bp - batch), (0, 0)))
    grid = (bp // tb,)

    h = packed["w5"].shape[1]
    h2 = packed["w4"].shape[1]
    flops = 2 * bp * ((fin + 1) * 3 * h + 3 * h * h2 + h2 * h + h * LANE)
    bytes_accessed = 4 * (xin.size + bp * LANE
                          + sum(int(v.size) for v in packed.values()))

    def const_spec(arr):
        # Constant block index -> weight/bias stays resident, no per-step DMA.
        return pl.BlockSpec(arr.shape, lambda i: (0, 0))

    out = pl.pallas_call(
        partial(critic_kernel, compute_dtype=compute_dtype),
        out_shape=jax.ShapeDtypeStruct((bp, LANE), jnp.float32),
        grid=grid,
        in_specs=[
            pl.BlockSpec((tb, fin + 1), lambda i: (i, 0)),   # streamed inputs
            const_spec(packed["w123"]),
            const_spec(packed["w4"]), const_spec(packed["b4"]),
            const_spec(packed["w5"]), const_spec(packed["b5"]),
            const_spec(packed["w6p"]), const_spec(packed["b6p"]),
        ],
        out_specs=pl.BlockSpec((tb, LANE), lambda i: (i, 0)),
        compiler_params=pltpu.CompilerParams(
            dimension_semantics=("parallel",),      # megacore sharding on v7x
            vmem_limit_bytes=32 * 1024 * 1024),     # safe on v5e/v6e/v7x
        cost_estimate=pl.CostEstimate(
            flops=flops, transcendentals=0, bytes_accessed=bytes_accessed),
    )(xin, packed["w123"], packed["w4"], packed["b4"],
      packed["w5"], packed["b5"], packed["w6p"], packed["b6p"])

    # Drop batch padding and the lane padding of the final Linear(H -> 1).
    return out[:batch, :1]


def init_params(key, observation_size, action_size, hidden_size, agents_size):
    """Deterministic init mirroring the PyTorch module's __init__ shapes.
    Weights stored as [in, out] (transposed from torch's [out, in])."""
    other_size = action_size * (agents_size - 1)
    ks = jax.random.split(key, 12)

    def unif(k, shape, bound):
        return jax.random.uniform(k, shape, jnp.float32, -bound, bound)

    h = hidden_size
    return {
        # va1 / va2 / va3: weights uniform(-1/sqrt(H), 1/sqrt(H)),
        # biases keep nn.Linear default uniform(-1/sqrt(fan_in), 1/sqrt(fan_in))
        "w1": unif(ks[0], (observation_size, h), 1.0 / math.sqrt(h)),
        "b1": unif(ks[1], (1, h), 1.0 / math.sqrt(observation_size)),
        "w2": unif(ks[2], (action_size, h), 1.0 / math.sqrt(h)),
        "b2": unif(ks[3], (1, h), 1.0 / math.sqrt(action_size)),
        "w3": unif(ks[4], (other_size, h), 1.0 / math.sqrt(h)),
        "b3": unif(ks[5], (1, h), 1.0 / math.sqrt(other_size)),
        # v2[0]: Linear(3H -> 2H)
        "w4": unif(ks[6], (3 * h, 2 * h), 1.0 / math.sqrt(2 * h)),
        "b4": unif(ks[7], (1, 2 * h), 1.0 / math.sqrt(3 * h)),
        # v2[2]: Linear(2H -> H)
        "w5": unif(ks[8], (2 * h, h), 1.0 / math.sqrt(h)),
        "b5": unif(ks[9], (1, h), 1.0 / math.sqrt(2 * h)),
        # v2[4]: Linear(H -> 1), weight uniform(-3e-3, 3e-3)
        "w6": unif(ks[10], (h, 1), 3e-3),
        "b6": unif(ks[11], (1, 1), 1.0 / math.sqrt(h)),
    }


def critic_reference(obs, act, oth, p):
    """Pure-JAX reference of the same forward for correctness checking."""
    x1 = jnp.maximum(obs @ p["w1"] + p["b1"], 0.0)
    x2 = jnp.maximum(act @ p["w2"] + p["b2"], 0.0)
    x3 = jnp.maximum(oth @ p["w3"] + p["b3"], 0.0)
    x = jnp.concatenate([x1, x2, x3], axis=1)
    y = jnp.maximum(x @ p["w4"] + p["b4"], 0.0)
    y = jnp.maximum(y @ p["w5"] + p["b5"], 0.0)
    return y @ p["w6"] + p["b6"]


if __name__ == "__main__":
    # Small, module-consistent shapes.
    batch = 8
    observation_size = 16
    action_size = 8
    agents_size = 3           # -> other_agents_actions has 8 * (3 - 1) = 16 feats
    hidden_size = 32

    key = jax.random.PRNGKey(0)
    k_obs, k_act, k_oth, k_par = jax.random.split(key, 4)

    obs = jax.random.normal(k_obs, (batch, observation_size), jnp.float32)
    act = jax.random.normal(k_act, (batch, action_size), jnp.float32)
    oth = jax.random.normal(
        k_oth, (batch, action_size * (agents_size - 1)), jnp.float32)

    params = init_params(k_par, observation_size, action_size,
                         hidden_size, agents_size)
    packed = pack_params(params, observation_size, action_size,
                         action_size * (agents_size - 1), hidden_size)

    out = critic_forward(obs, act, oth, packed)   # f32 default: exact vs. torch
    out = jax.block_until_ready(out)

    ref = critic_reference(obs, act, oth, params)
    assert out.shape == (batch, 1)
    assert jnp.allclose(out, ref, atol=1e-5, rtol=1e-5), (out, ref)

    print("KERNEL_OK")
</pallas_src>

<mosaic_0001>
module attributes {stable_mosaic.version = 11 : i64} {
  func.func @critic_kernel(%arg0: i32, %arg1: memref<8x41xf32, #tpu.memory_space<vmem>>, %arg2: memref<41x96xf32, #tpu.memory_space<vmem>>, %arg3: memref<96x64xf32, #tpu.memory_space<vmem>>, %arg4: memref<1x64xf32, #tpu.memory_space<vmem>>, %arg5: memref<64x32xf32, #tpu.memory_space<vmem>>, %arg6: memref<1x32xf32, #tpu.memory_space<vmem>>, %arg7: memref<32x128xf32, #tpu.memory_space<vmem>>, %arg8: memref<1x128xf32, #tpu.memory_space<vmem>>, %arg9: memref<8x128xf32, #tpu.memory_space<vmem>>) attributes {dimension_semantics = [#tpu.dimension_semantics<parallel>], iteration_bounds = array<i64: 1>, scalar_prefetch = 0 : i64, scratch_operands = 0 : i64, tpu.core_type = #tpu.core_type<tc>, window_params = [{transform_indices = @transform_0, window_bounds = array<i64: 8, 41>}, {pipeline_mode = #tpu.pipeline_mode<synchronous>, transform_indices = @transform_1, window_bounds = array<i64: 41, 96>}, {pipeline_mode = #tpu.pipeline_mode<synchronous>, transform_indices = @transform_2, window_bounds = array<i64: 96, 64>}, {pipeline_mode = #tpu.pipeline_mode<synchronous>, transform_indices = @transform_3, window_bounds = array<i64: 1, 64>}, {pipeline_mode = #tpu.pipeline_mode<synchronous>, transform_indices = @transform_4, window_bounds = array<i64: 64, 32>}, {pipeline_mode = #tpu.pipeline_mode<synchronous>, transform_indices = @transform_5, window_bounds = array<i64: 1, 32>}, {pipeline_mode = #tpu.pipeline_mode<synchronous>, transform_indices = @transform_6, window_bounds = array<i64: 32, 128>}, {pipeline_mode = #tpu.pipeline_mode<synchronous>, transform_indices = @transform_7, window_bounds = array<i64: 1, 128>}, {transform_indices = @transform_8, window_bounds = array<i64: 8, 128>}]} {
    %c0 = arith.constant 0 : index
    %c0_0 = arith.constant 0 : index
    %0 = vector.load %arg1[%c0, %c0_0] : memref<8x41xf32, #tpu.memory_space<vmem>>, vector<8x41xf32>
    %c0_1 = arith.constant 0 : index
    %c0_2 = arith.constant 0 : index
    %1 = vector.load %arg2[%c0_1, %c0_2] : memref<41x96xf32, #tpu.memory_space<vmem>>, vector<41x96xf32>
    %cst = arith.constant dense<0.000000e+00> : vector<8x96xf32>
    %2 = tpu.matmul %0, %1, %cst {dimension_numbers = #tpu.dot_dimension_numbers<[1], [0], [0], [1], [0, 0, 1, 1], [], []>} : vector<8x41xf32>, vector<41x96xf32>, vector<8x96xf32> -> vector<8x96xf32>
    %cst_3 = arith.constant 0.000000e+00 : f32
    %3 = vector.broadcast %cst_3 : f32 to vector<8x96xf32>
    %4 = arith.maximumf %2, %3 : vector<8x96xf32>
    %c0_4 = arith.constant 0 : index
    %c0_5 = arith.constant 0 : index
    %5 = vector.load %arg3[%c0_4, %c0_5] : memref<96x64xf32, #tpu.memory_space<vmem>>, vector<96x64xf32>
    %cst_6 = arith.constant dense<0.000000e+00> : vector<8x64xf32>
    %6 = tpu.matmul %4, %5, %cst_6 {dimension_numbers = #tpu.dot_dimension_numbers<[1], [0], [0], [1], [0, 0, 1, 1], [], []>} : vector<8x96xf32>, vector<96x64xf32>, vector<8x64xf32> -> vector<8x64xf32>
    %c0_7 = arith.constant 0 : index
    %c0_8 = arith.constant 0 : index
    %7 = vector.load %arg4[%c0_7, %c0_8] : memref<1x64xf32, #tpu.memory_space<vmem>>, vector<1x64xf32>
    %8 = vector.broadcast %7 : vector<1x64xf32> to vector<8x64xf32>
    %9 = arith.addf %6, %8 : vector<8x64xf32>
    %cst_9 = arith.constant 0.000000e+00 : f32
    %10 = vector.broadcast %cst_9 : f32 to vector<8x64xf32>
    %11 = arith.maximumf %9, %10 : vector<8x64xf32>
    %c0_10 = arith.constant 0 : index
    %c0_11 = arith.constant 0 : index
    %12 = vector.load %arg5[%c0_10, %c0_11] : memref<64x32xf32, #tpu.memory_space<vmem>>, vector<64x32xf32>
    %cst_12 = arith.constant dense<0.000000e+00> : vector<8x32xf32>
    %13 = tpu.matmul %11, %12, %cst_12 {dimension_numbers = #tpu.dot_dimension_numbers<[1], [0], [0], [1], [0, 0, 1, 1], [], []>} : vector<8x64xf32>, vector<64x32xf32>, vector<8x32xf32> -> vector<8x32xf32>
    %c0_13 = arith.constant 0 : index
    %c0_14 = arith.constant 0 : index
    %14 = vector.load %arg6[%c0_13, %c0_14] : memref<1x32xf32, #tpu.memory_space<vmem>>, vector<1x32xf32>
    %15 = vector.broadcast %14 : vector<1x32xf32> to vector<8x32xf32>
    %16 = arith.addf %13, %15 : vector<8x32xf32>
    %cst_15 = arith.constant 0.000000e+00 : f32
    %17 = vector.broadcast %cst_15 : f32 to vector<8x32xf32>
    %18 = arith.maximumf %16, %17 : vector<8x32xf32>
    %c0_16 = arith.constant 0 : index
    %c0_17 = arith.constant 0 : index
    %19 = vector.load %arg7[%c0_16, %c0_17] : memref<32x128xf32, #tpu.memory_space<vmem>>, vector<32x128xf32>
    %cst_18 = arith.constant dense<0.000000e+00> : vector<8x128xf32>
    %20 = tpu.matmul %18, %19, %cst_18 {dimension_numbers = #tpu.dot_dimension_numbers<[1], [0], [0], [1], [0, 0, 1, 1], [], []>} : vector<8x32xf32>, vector<32x128xf32>, vector<8x128xf32> -> vector<8x128xf32>
    %c0_19 = arith.constant 0 : index
    %c0_20 = arith.constant 0 : index
    %21 = vector.load %arg8[%c0_19, %c0_20] : memref<1x128xf32, #tpu.memory_space<vmem>>, vector<1x128xf32>
    %22 = vector.broadcast %21 : vector<1x128xf32> to vector<8x128xf32>
    %23 = arith.addf %20, %22 : vector<8x128xf32>
    %c0_21 = arith.constant 0 : index
    %c0_22 = arith.constant 0 : index
    %24 = vector.load %arg9[%c0_21, %c0_22] : memref<8x128xf32, #tpu.memory_space<vmem>>, vector<8x128xf32>
    tpu.vector_store %arg9[%c0_21, %c0_22], %23 {strides = array<i32>} : memref<8x128xf32, #tpu.memory_space<vmem>>, vector<8x128xf32>,
    return
  }
  func.func @transform_0(%arg0: i32) -> (i32, i32) {
    %c0_i32 = arith.constant 0 : i32
    %c0_i32_0 = arith.constant 0 : i32
    return %arg0, %c0_i32 : i32, i32
  }
  func.func @transform_1(%arg0: i32) -> (i32, i32) {
    %c0_i32 = arith.constant 0 : i32
    %c0_i32_0 = arith.constant 0 : i32
    %c0_i32_1 = arith.constant 0 : i32
    return %c0_i32, %c0_i32_0 : i32, i32
  }
  func.func @transform_2(%arg0: i32) -> (i32, i32) {
    %c0_i32 = arith.constant 0 : i32
    %c0_i32_0 = arith.constant 0 : i32
    %c0_i32_1 = arith.constant 0 : i32
    return %c0_i32, %c0_i32_0 : i32, i32
  }
  func.func @transform_3(%arg0: i32) -> (i32, i32) {
    %c0_i32 = arith.constant 0 : i32
    %c0_i32_0 = arith.constant 0 : i32
    %c0_i32_1 = arith.constant 0 : i32
    return %c0_i32, %c0_i32_0 : i32, i32
  }
  func.func @transform_4(%arg0: i32) -> (i32, i32) {
    %c0_i32 = arith.constant 0 : i32
    %c0_i32_0 = arith.constant 0 : i32
    %c0_i32_1 = arith.constant 0 : i32
    return %c0_i32, %c0_i32_0 : i32, i32
  }
  func.func @transform_5(%arg0: i32) -> (i32, i32) {
    %c0_i32 = arith.constant 0 : i32
    %c0_i32_0 = arith.constant 0 : i32
    %c0_i32_1 = arith.constant 0 : i32
    return %c0_i32, %c0_i32_0 : i32, i32
  }
  func.func @transform_6(%arg0: i32) -> (i32, i32) {
    %c0_i32 = arith.constant 0 : i32
    %c0_i32_0 = arith.constant 0 : i32
    %c0_i32_1 = arith.constant 0 : i32
    return %c0_i32, %c0_i32_0 : i32, i32
  }
  func.func @transform_7(%arg0: i32) -> (i32, i32) {
    %c0_i32 = arith.constant 0 : i32
    %c0_i32_0 = arith.constant 0 : i32
    %c0_i32_1 = arith.constant 0 : i32
    return %c0_i32, %c0_i32_0 : i32, i32
  }
  func.func @transform_8(%arg0: i32) -> (i32, i32) {
    %c0_i32 = arith.constant 0 : i32
    %c0_i32_0 = arith.constant 0 : i32
    return %arg0, %c0_i32 : i32, i32
  }
}

</mosaic_0001>

<bundles_post_ra>
// kernel: tpu_custom_call.1
= control target key start
LH: loop header
LB: loop body
LE: loop exit
PB: predicated region body
PF: predicated region fallthrough
CT: control target
= control target key end

     0   :  { %v589_v3 = vmov 0.0|0.0   ;;  %vm590_vm0 = vmmov 0   ;;  %v591_v6 = vmov 0.0   ;;  %vm41_vm1 = vcmask 1040384   ;;  %s776_s0 = inlined_call_operand.vmem [shape: f32[8,41], index: 0, kind: input, shape index: {}]   ;;  %s777_s1 = inlined_call_operand.vmem [shape: f32[41,96], index: 1, kind: input, shape index: {}]   ;;  %s778_s2 = inlined_call_operand.vmem [shape: f32[96,64], index: 2, kind: input, shape index: {}]   ;;  %s779_s3 = inlined_call_operand.vmem [shape: f32[1,64], index: 3, kind: input, shape index: {}]   ;;  %s780_s4 = inlined_call_operand.vmem [shape: f32[64,32], index: 4, kind: input, shape index: {}]   ;;  %s781_s5 = inlined_call_operand.vmem [shape: f32[1,32], index: 5, kind: input, shape index: {}]   ;;  %s782_s6 = inlined_call_operand.vmem [shape: f32[32,128], index: 6, kind: input, shape index: {}]   ;;  %s783_s7 = inlined_call_operand.vmem [shape: f32[1,128], index: 7, kind: input, shape index: {}]   ;;  %s784_s8 = inlined_call_operand.hbm [shape: f32[8,128], index: 8, kind: output, shape index: {}]  }
   0x1   :  { %v31_v0 = vld [vmem:[%s777_s1] sm:$0xff]  ;;  %v32_v1 = vld [vmem:[%s777_s1 + $0x8] sm:$0xff]  ;;  %v33_v2 = vld [vmem:[%s777_s1 + $0x10] sm:$0xff]  ;;  %514 = vmatprep.subr.bf16.mxu0 %v589_v3  ;;  %524 = vmatprep.subr.bf16.mxu1 %v589_v3 }
   0x2   :  { %v515_v4 = vpack.c.bf16 %v32_v1, %v31_v0  ;;  %v34_v5 = vld [vmem:[%s777_s1 + $0x18] sm:$0xff]  ;;  %454 = vmatprep.mubr.msk.f32.mxu0 %vm590_vm0, %v591_v6  ;;  %v116_v7 = vld [vmem:[%s778_s2] sm:$0xff]  ;;  %481 = vmatprep.mubr.msk.f32.mxu1 %vm590_vm0, %v591_v6  ;;  %v117_v9 = vld [vmem:[%s778_s2 + $0x8] sm:$0xff] }
   0x3   :  { %v518_v8 = vpack.c.bf16 %v34_v5, %v33_v2  ;;  %v118_v10 = vld [vmem:[%s778_s2 + $0x10] sm:$0xff]  ;;  %v119_v11 = vld [vmem:[%s778_s2 + $0x18] sm:$0xff]  ;;  %v35_v12 = vld [vmem:[%s777_s1 + $0x20] sm:$0xff]  ;;  %v525_v14 = vpack.c.bf16 %v117_v9, %v116_v7 }
   0x4   :  { %516 = vmatpush3.bf16.msra.mxu0 %v515_v4  ;;  %v36_v13 = vld [vmem:[%s777_s1 + $0x28] sm:$0x1]  ;;  %v528_v15 = vpack.c.bf16 %v119_v11, %v118_v10 }
   0x5   :  { %517 = vmatprep.subr.bf16.mxu0 %v589_v3  ;;  %526 = vmatpush3.bf16.msra.mxu1 %v525_v14 }
   0x6   :  { %13 = vsyncpa [#allocation3], 0  ;;  %v521_v16 = vpack.c.bf16 %v36_v13, %v35_v12  ;;  %527 = vmatprep.subr.bf16.mxu1 %v589_v3  ;;  %v120_v17 = vld [vmem:[%s778_s2 + $0x20] sm:$0xff]  ;;  %v121_v18 = vld [vmem:[%s778_s2 + $0x28] sm:$0xff]  ;;  %vm592_vm2 = vmmov 1   ;;  %vm37_vm4 = vcmask 334848  }
   0x7   :  { %vm522_vm3 = vmpackc.low %vm41_vm1, %vm592_vm2  ;;  %v531_v19 = vpack.c.bf16 %v121_v18, %v120_v17  ;;  %v30_v20 = vld [vmem:[%s776_s0] sm:$0xff]  ;;  %v122_v21 = vld [vmem:[%s778_s2 + $0x30] sm:$0xff]  ;;  %vm135_vm5 = vcmask 785408   ;;  %vm225_vm6 = vcmask 523264   ;;  %vm311_vm7 = vcmask 261120   ;;  %s593_s22 = smov [#allocation2]  }
   0x8   :  { %519 = vmatpush3.bf16.msra.mxu0 %v518_v8  ;;  %v123_v22 = vld [vmem:[%s778_s2 + $0x38] sm:$0xff]  ;;  %v124_v24 = vld [vmem:[%s778_s2 + $0x40] sm:$0xff]  ;;  %v125_v25 = vld [vmem:[%s778_s2 + $0x48] sm:$0xff]  ;;  %s392_s23 = sshll.u32 %s593_s22, 4  ;;  %s393_s23 = int_to_ptr.vmem [resolvable:$true] %s392_s23 }
   0x9   :  { %520 = vmatprep.subr.bf16.mxu0 %v589_v3  ;;  %529 = vmatpush3.bf16.msra.mxu1 %v528_v15  ;;  %v534_v23 = vpack.c.bf16 %v123_v22, %v122_v21  ;;  %v537_v26 = vpack.c.bf16 %v125_v25, %v124_v24  ;;  %v126_v27 = vld [vmem:[%s778_s2 + $0x50] sm:$0xff]  ;;  %v127_v28 = vld [vmem:[%s778_s2 + $0x58] sm:$0xff]  ;;  %v210_v30 = vld [vmem:[%s780_s4] sm:$0xff]  ;;  %p570_p1 = scmp.lt.s32.totalorder %s393_s23, %s393_s23 }
   0xa   :  { %530 = vmatprep.subr.bf16.mxu1 %v589_v3  ;;  %v540_v29 = vpack.c.bf16 %v127_v28, %v126_v27  ;;  %v211_v31 = vld [vmem:[%s780_s4 + $0x8] sm:$0xff]  ;;  %v212_v32 = vld [vmem:[%s780_s4 + $0x10] sm:$0xff]  ;;  %v213_v34 = vld [vmem:[%s780_s4 + $0x18] sm:$0xff] }
   0xb   :  { %v543_v33 = vpack.c.bf16 %v211_v31, %v210_v30  ;;  %v546_v35 = vpack.c.bf16 %v213_v34, %v212_v32  ;;  %v214_v36 = vld [vmem:[%s780_s4 + $0x20] sm:$0xff]  ;;  %v215_v37 = vld [vmem:[%s780_s4 + $0x28] sm:$0xff]  ;;  %v216_v42 = vld [vmem:[%s780_s4 + $0x30] sm:$0xff] }
   0xc   :  { %523 = vmatpush3.bf16.msk.msra.mxu0 %vm522_vm3, %v521_v16  ;;  %v549_v38 = vpack.c.bf16 %v215_v37, %v214_v36  ;;  %v217_v43 = vld [vmem:[%s780_s4 + $0x38] sm:$0xff]  ;;  %v300_v45 = vld [vmem:[%s782_s6] sm:$0xff]  ;;  %v301_v46 = vld [vmem:[%s782_s6 + $0x8] sm:$0xff] }
   0xd   :  { %542 = vmatprep.subr.bf16.mxu0 %v589_v3  ;;  %532 = vmatpush3.bf16.msra.mxu1 %v531_v19  ;;  %v552_v44 = vpack.c.bf16 %v217_v43, %v216_v42  ;;  %v555_v47 = vpack.c.bf16 %v301_v46, %v300_v45  ;;  %v402_v48 = vld [vmem:[%s779_s3] ss:$0 sm:$0xff]  ;;  %v302_v53 = vld [vmem:[%s782_s6 + $0x10] sm:$0xff]  ;;  %v303_v54 = vld [vmem:[%s782_s6 + $0x18] sm:$0xff]  ;;  %s565_s6 = scalar_lea.vmem %s393_s23, 128 }
   0xe   :  { %533 = vmatprep.subr.bf16.mxu1 %v589_v3  ;;  %v558_v55 = vpack.c.bf16 %v303_v54, %v302_v53  ;;  %v404_v56 = vld [vmem:[%s781_s5] ss:$0 sm:$0xff]  ;;  %p566_p0 = scmp.ne.s32.totalorder %s393_s23, %s565_s6  ;;  %p571_p2 = scmp.lt.s32.totalorder %s565_s6, %s565_s6 }
   0xf   :  { %455 = vmatmul.mubr.msk.f32.vlgmr.msra.gmra.mrb[0].mxu0 %vm37_vm4, %v30_v20  ;;  %v406_v61 = vld [vmem:[%s783_s7] ss:$0 sm:$0xff] }
  0x10   :  { %500 = vmatprep.mubr.msk.f32.mxu0 %vm590_vm0, %v591_v6  ;;  %544 = vmatpush3.bf16.msra.mxu0 %v543_v33  ;;  %p572_p3 = por %p571_p2, %p570_p1 }
  0x11   :  { %535 = vmatpush3.bf16.msra.mxu1 %v534_v23  ;;  %545 = vmatprep.subr.bf16.mxu0 %v589_v3 }
  0x12   :  { %536 = vmatprep.subr.bf16.mxu1 %v589_v3  ;;  %p573_p4 = pnand %p572_p3, %p566_p0 }
  0x14   :  { %547 = vmatpush3.bf16.msra.mxu0 %v546_v35 }
  0x15   :  { %538 = vmatpush3.bf16.msra.mxu1 %v537_v26  ;;  %548 = vmatprep.subr.bf16.mxu0 %v589_v3 }
  0x16   :  { %539 = vmatprep.subr.bf16.mxu1 %v589_v3 }
  0x18   :  { %550 = vmatpush3.bf16.msra.mxu0 %v549_v38 }
  0x19   :  { %541 = vmatpush3.bf16.msra.mxu1 %v540_v29  ;;  %551 = vmatprep.subr.bf16.mxu0 %v589_v3 }
  0x1a   :  { %554 = vmatprep.subr.bf16.mxu1 %v589_v3 }
  0x1c   :  { %553 = vmatpush3.bf16.msra.mxu0 %v552_v44 }
  0xe2   :  { %v111_v39 = vpop.f32.mrb[0].mxu0 }
  0xe3   :  { %v115_v40 = vmax.f32 %v111_v39, 0.0  ;;  %v456_v41 = vpop.f32.mrb[1].mxu0 }
  0xe5   :  { %482 = vmatmul.mubr.msk.f32.vlgmr.msra.gmra.mrb[0].mxu1 %vm135_vm5, %v115_v40 }
  0xe6   :  { %511 = vmatprep.mubr.msk.f32.mxu1 %vm590_vm0, %v591_v6  ;;  %556 = vmatpush3.bf16.msra.mxu1 %v555_v47 }
  0xe7   :  { %557 = vmatprep.subr.bf16.mxu1 %v589_v3 }
  0xea   :  { %559 = vmatpush3.bf16.msra.mxu1 %v558_v55 }
 0x1b8   :  { %v205_v49 = vpop.f32.mrb[0].mxu1 }
 0x1b9   :  { %v206_v50 = vadd.f32 %v402_v48, %v205_v49  ;;  %v483_v51 = vpop.f32.mrb[1].mxu1 }
 0x1bb   :  { %v209_v52 = vmax.f32 %v206_v50, 0.0 }
 0x1bd   :  { %501 = vmatmul.mubr.msk.f32.vlgmr.msra.gmra.mrb[2].mxu0 %vm225_vm6, %v209_v52 }
 0x290   :  { %v295_v57 = vpop.f32.mrb[2].mxu0 }
 0x291   :  { %v296_v58 = vadd.f32 %v404_v56, %v295_v57  ;;  %v502_v59 = vpop.f32.mrb[3].mxu0 }
 0x293   :  { %v299_v60 = vmax.f32 %v296_v58, 0.0 }
 0x295   :  { %512 = vmatmul.mubr.msk.f32.vlgmr.msra.gmra.mrb[2].mxu1 %vm311_vm7, %v299_v60 }
 0x368   :  { %v381_v62 = vpop.f32.mrb[2].mxu1 }
 0x369   :  { %v382_v63 = vadd.f32 %v406_v61, %v381_v62  ;;  %v513_v0 = vpop.f32.mrb[3].mxu1 }
 0x36b   :  { %385 = vst [vmem:[#allocation2] sm:$0xff] %v382_v63 }
 0x36c   :  { %576 = shalt.err (!%p573_p4)
}
 0x36d   :  { %s577_s25 = scalar_lea.hbm %s784_s8, 128 }
 0x36e   :  { %p578_p5 = scmp.ne.s32.totalorder %s784_s8, %s577_s25  ;;  %p581_p6 = scmp.lt.u32.totalorder %s577_s25, %s784_s8 }
 0x370   :  { %p583_p7 = pnand %p581_p6, %p578_p5 }
 0x372   :  { %586 = shalt.err (!%p583_p7)
}
 0x373   :  { %395 = dma.vmem_to_hbm [thread:$0]  %s393_s23, 128, %s784_s8, [#allocation3]  }
 0x374   :  { %587 = dma.done.wait [#allocation3], 128  }
 0x375   :  { %588 = vsyncadd [#allocation3], 4294967168 }
 0x376   :  { %399 = vsyncpa [#allocation3], 1 }

</bundles_post_ra>
